<compile_context>
chip_gen: v5e
topology: v5e:2x2
jax: 0.10.0
libtpu: 0.0.40
codegen_flags: <defaults>
</compile_context>

<pallas_src>
import jax
import jax.numpy as jnp
from jax.experimental import pallas as pl
from jax.experimental.pallas import tpu as pltpu


def linear_sigmoid_kernel(w_sref, b_sref, x_ref, o_ref):
    # w_sref: (d_in,) f32 in SMEM, b_sref: (1,) f32 in SMEM (scalar-prefetched).
    # x_ref : (d_in, 8, block_lanes) f32 in VMEM  (batch = sublane x lane).
    # o_ref : (8, block_lanes) sublane- and lane-dense output slab.
    d_in = x_ref.shape[0]
    z = jnp.full(o_ref.shape, b_sref[0], dtype=jnp.float32)
    # Unrolled scalar-vector FMAs on the VPU (d_in is a static Python int = 4);
    # each x_ref[k] is a full (8, block_lanes) vreg slab.
    for k in range(d_in):
        z = z + x_ref[k] * w_sref[k]
    # sigmoid(z) = 0.5 * tanh(0.5 * z) + 0.5  -- one EUP op, exact, no overflow.
    o_ref[...] = (0.5 * jnp.tanh(0.5 * z) + 0.5).astype(o_ref.dtype)


def linear_sigmoid(x, w, b, *, block_lanes=2048):
    """x: (N, d_in); w: (d_in, 1); b: (1,).  Returns sigmoid(x @ w + b): (N, 1)."""
    n, d_in = x.shape
    d_out = w.shape[1]
    assert d_out == 1, "module is Linear(4, 1)"

    # Batch -> (8 sublanes) x (lanes).  Pad lanes to the 8x128 slab granularity,
    # clamp the block to the problem size, then pad to block granularity.
    lanes_needed = pl.cdiv(n, 8 * 128) * 128                 # 8*lanes_needed >= n
    block_lanes = max(128, min(block_lanes, lanes_needed))
    block_lanes = (block_lanes // 128) * 128                 # multiple of 128
    lanes_padded = pl.cdiv(lanes_needed, block_lanes) * block_lanes
    n_pad = 8 * lanes_padded

    # (N, d_in) -> (d_in, n_pad) -> free row-major view (d_in, 8, lanes_padded).
    x_t = jnp.pad(x.T, ((0, 0), (0, n_pad - n))).reshape(d_in, 8, lanes_padded)
    w_flat = w.reshape(d_in).astype(jnp.float32)             # (d_in,)  -> SMEM
    b_flat = b.reshape(d_out).astype(jnp.float32)            # (1,)     -> SMEM

    grid = (lanes_padded // block_lanes,)

    y_slab = pl.pallas_call(
        linear_sigmoid_kernel,
        out_shape=jax.ShapeDtypeStruct((8, lanes_padded), x.dtype),
        grid_spec=pltpu.PrefetchScalarGridSpec(
            num_scalar_prefetch=2,                           # w_flat, b_flat -> SMEM
            grid=grid,
            in_specs=[
                # last two block dims (8, block_lanes): sublane-dense, lanes % 128 == 0.
                pl.BlockSpec((d_in, 8, block_lanes),
                             lambda i, w_ref, b_ref: (0, 0, i)),
            ],
            out_specs=pl.BlockSpec((8, block_lanes),
                                   lambda i, w_ref, b_ref: (0, i)),
        ),
        compiler_params=pltpu.CompilerParams(
            dimension_semantics=("parallel",),               # shardable across TCs (v7x)
        ),
    )(w_flat, b_flat, x_t)

    # (8, lanes_padded) -> (n_pad,) row-major restores the original batch order.
    return y_slab.reshape(n_pad)[:n].reshape(n, 1)


if __name__ == "__main__":
    key = jax.random.PRNGKey(0)
    kx, kw, kb = jax.random.split(key, 3)

    batch, in_features, out_features = 1000, 4, 1   # pads to one 8x128 slab (1024 rows)

    # Deterministic init (mimics torch.nn.Linear uniform(-1/sqrt(in), 1/sqrt(in))).
    bound = 1.0 / jnp.sqrt(jnp.float32(in_features))
    w = jax.random.uniform(kw, (in_features, out_features), jnp.float32, -bound, bound)
    b = jax.random.uniform(kb, (out_features,), jnp.float32, -bound, bound)

    x = jax.random.normal(kx, (batch, in_features), jnp.float32)

    y = linear_sigmoid(x, w, b)
    y = jax.block_until_ready(y)

    # Reference check in plain JAX (tanh formulation is exact -> tight tolerance).
    y_ref = jax.nn.sigmoid(x @ w + b[None, :])
    assert y.shape == (batch, out_features)
    assert jnp.allclose(y, y_ref, atol=1e-5), "mismatch vs reference"

    print("KERNEL_OK")
</pallas_src>

<mosaic_0001>
module attributes {stable_mosaic.version = 11 : i64} {
  func.func @linear_sigmoid_kernel(%arg0: i32, %arg1: memref<4xf32, #tpu.memory_space<smem>>, %arg2: memref<1xf32, #tpu.memory_space<smem>>, %arg3: memref<4x8x128xf32, #tpu.memory_space<vmem>>, %arg4: memref<8x128xf32, #tpu.memory_space<vmem>>) attributes {dimension_semantics = [#tpu.dimension_semantics<parallel>], iteration_bounds = array<i64: 1>, scalar_prefetch = 2 : i64, scratch_operands = 0 : i64, tpu.core_type = #tpu.core_type<tc>, window_params = [{transform_indices = @transform_0, window_bounds = array<i64: 4, 8, 128>}, {transform_indices = @transform_1, window_bounds = array<i64: 8, 128>}]} {
    %c0 = arith.constant 0 : index
    %0 = memref.load %arg2[%c0] : memref<1xf32, #tpu.memory_space<smem>>
    %1 = vector.broadcast %0 : f32 to vector<8x128xf32>
    %c0_0 = arith.constant 0 : index
    %c0_1 = arith.constant 0 : index
    %c0_2 = arith.constant 0 : index
    %2 = vector.load %arg3[%c0_0, %c0_1, %c0_2] : memref<4x8x128xf32, #tpu.memory_space<vmem>>, vector<1x8x128xf32>
    %3 = vector.shape_cast %2 : vector<1x8x128xf32> to vector<8x128xf32>
    %c0_3 = arith.constant 0 : index
    %4 = memref.load %arg1[%c0_3] : memref<4xf32, #tpu.memory_space<smem>>
    %5 = vector.broadcast %4 : f32 to vector<8x128xf32>
    %6 = arith.mulf %3, %5 : vector<8x128xf32>
    %7 = arith.addf %1, %6 : vector<8x128xf32>
    %c1 = arith.constant 1 : index
    %c0_4 = arith.constant 0 : index
    %c0_5 = arith.constant 0 : index
    %8 = vector.load %arg3[%c1, %c0_4, %c0_5] : memref<4x8x128xf32, #tpu.memory_space<vmem>>, vector<1x8x128xf32>
    %9 = vector.shape_cast %8 : vector<1x8x128xf32> to vector<8x128xf32>
    %c1_6 = arith.constant 1 : index
    %10 = memref.load %arg1[%c1_6] : memref<4xf32, #tpu.memory_space<smem>>
    %11 = vector.broadcast %10 : f32 to vector<8x128xf32>
    %12 = arith.mulf %9, %11 : vector<8x128xf32>
    %13 = arith.addf %7, %12 : vector<8x128xf32>
    %c2 = arith.constant 2 : index
    %c0_7 = arith.constant 0 : index
    %c0_8 = arith.constant 0 : index
    %14 = vector.load %arg3[%c2, %c0_7, %c0_8] : memref<4x8x128xf32, #tpu.memory_space<vmem>>, vector<1x8x128xf32>
    %15 = vector.shape_cast %14 : vector<1x8x128xf32> to vector<8x128xf32>
    %c2_9 = arith.constant 2 : index
    %16 = memref.load %arg1[%c2_9] : memref<4xf32, #tpu.memory_space<smem>>
    %17 = vector.broadcast %16 : f32 to vector<8x128xf32>
    %18 = arith.mulf %15, %17 : vector<8x128xf32>
    %19 = arith.addf %13, %18 : vector<8x128xf32>
    %c3 = arith.constant 3 : index
    %c0_10 = arith.constant 0 : index
    %c0_11 = arith.constant 0 : index
    %20 = vector.load %arg3[%c3, %c0_10, %c0_11] : memref<4x8x128xf32, #tpu.memory_space<vmem>>, vector<1x8x128xf32>
    %21 = vector.shape_cast %20 : vector<1x8x128xf32> to vector<8x128xf32>
    %c3_12 = arith.constant 3 : index
    %22 = memref.load %arg1[%c3_12] : memref<4xf32, #tpu.memory_space<smem>>
    %23 = vector.broadcast %22 : f32 to vector<8x128xf32>
    %24 = arith.mulf %21, %23 : vector<8x128xf32>
    %25 = arith.addf %19, %24 : vector<8x128xf32>
    %cst = arith.constant 5.000000e-01 : f32
    %26 = vector.broadcast %cst : f32 to vector<8x128xf32>
    %27 = arith.mulf %26, %25 : vector<8x128xf32>
    %28 = math.tanh %27 : vector<8x128xf32>
    %cst_13 = arith.constant 5.000000e-01 : f32
    %29 = vector.broadcast %cst_13 : f32 to vector<8x128xf32>
    %30 = arith.mulf %29, %28 : vector<8x128xf32>
    %cst_14 = arith.constant 5.000000e-01 : f32
    %31 = vector.broadcast %cst_14 : f32 to vector<8x128xf32>
    %32 = arith.addf %30, %31 : vector<8x128xf32>
    %c0_15 = arith.constant 0 : index
    %c0_16 = arith.constant 0 : index
    %33 = vector.load %arg4[%c0_15, %c0_16] : memref<8x128xf32, #tpu.memory_space<vmem>>, vector<8x128xf32>
    tpu.vector_store %arg4[%c0_15, %c0_16], %32 {strides = array<i32>} : memref<8x128xf32, #tpu.memory_space<vmem>>, vector<8x128xf32>,
    return
  }
  func.func @transform_0(%arg0: i32, %arg1: memref<4xf32, #tpu.memory_space<smem>>, %arg2: memref<1xf32, #tpu.memory_space<smem>>) -> (i32, i32, i32) {
    %c0_i32 = arith.constant 0 : i32
    %c0_i32_0 = arith.constant 0 : i32
    %c0_i32_1 = arith.constant 0 : i32
    return %c0_i32, %c0_i32_0, %arg0 : i32, i32, i32
  }
  func.func @transform_1(%arg0: i32, %arg1: memref<4xf32, #tpu.memory_space<smem>>, %arg2: memref<1xf32, #tpu.memory_space<smem>>) -> (i32, i32) {
    %c0_i32 = arith.constant 0 : i32
    %c0_i32_0 = arith.constant 0 : i32
    return %c0_i32, %arg0 : i32, i32
  }
}

</mosaic_0001>

<bundles_post_ra>
// kernel: tpu_custom_call.1
= control target key start
LH: loop header
LB: loop body
LE: loop exit
PB: predicated region body
PF: predicated region fallthrough
CT: control target
= control target key end

     0   :  { %s159_s15 = smov [#allocation3]   ;;  %s196_s0 = inlined_call_operand.vmem [shape: f32[4], index: 0, kind: input, shape index: {}]   ;;  %s197_s1 = inlined_call_operand.<no memory space> [shape: f32[1], index: 1, kind: input, shape index: {}]   ;;  %s198_s2 = inlined_call_operand.hbm [shape: f32[4,8,128], index: 2, kind: input, shape index: {}]   ;;  %s199_s3 = inlined_call_operand.hbm [shape: f32[8,128], index: 3, kind: output, shape index: {}]  }
   0x1   :  { %s9_s14 = sshll.u32 %s196_s0, 4  ;;  %s10_s14 = int_to_ptr.vmem [resolvable:$true] %s9_s14 }
   0x2   :  { %12 = dma.vmem_to_smem %s10_s14, 16, %s159_s15, [#allocation2] }
   0x3   :  { %153 = dma.done.wait [#allocation2], 16 }
   0x4   :  { %154 = vsyncadd [#allocation2], 4294967280 }
   0x5   :  { %16 = sfence }
   0x6   :  { %17 = vsyncpa [#allocation6], 0 }
   0x7   :  { %18 = vsyncpa [#allocation7], 0  ;;  %s23_s18 = sshll.u32 %s198_s2, 4  ;;  %s160_s19 = smov [#allocation5]   ;;  %s24_s18 = int_to_ptr.hbm [resolvable:$true] %s23_s18 }
   0x8   :  { %s25_s20 = sshll.u32 %s160_s19, 4  ;;  %s161_s21 = smov 128   ;;  %s26_s20 = int_to_ptr.vmem [resolvable:$true] %s25_s20 }
   0x9   :  { %s162_s22 = smov 8  }
   0xa   :  { %31 = dma.hbm_to_vmem [thread:$0]  %s24_s18, 512, %s26_s20, [#allocation6], %s161_s21, %s161_s21, %s162_s22  }
   0xb   :  { %155 = dma.done.wait [#allocation6], 512  }
   0xc   :  { %156 = vsyncadd [#allocation6], 4294966784  ;;  %s39_s0 = sld [smem:[#allocation3]]  ;;  %v37_v0 = vstv %s197_s1  ;;  %v38_v1 = vld [vmem:[#allocation5] sm:$0xff]  ;;  %v44_v3 = vld [vmem:[#allocation5 + $0x8] sm:$0xff]  ;;  %s163_s1 = smov [#allocation8]  }
   0xd   :  { %s83_s23 = sld [smem:[#allocation3 + $0x1]]  ;;  %v50_v4 = vld [vmem:[#allocation5 + $0x10] sm:$0xff]  ;;  %v56_v9 = vld [vmem:[#allocation5 + $0x18] sm:$0xff]  ;;  %s71_s2 = sshll.u32 %s163_s1, 4  ;;  %s72_s2 = int_to_ptr.vmem [resolvable:$true] %s71_s2 }
   0xe   :  { %s84_s24 = sld [smem:[#allocation3 + $0x2]]  ;;  %s73_s30 = sshll.u32 %s199_s3, 4  ;;  %s74_s30 = int_to_ptr.hbm [resolvable:$true] %s73_s30 }
   0xf   :  { %s85_s25 = sld [smem:[#allocation3 + $0x3]] }
  0x12   :  { %v40_v2 = vstv %s39_s0 }
  0x13   :  { %v41_v5 = vmul.f32 %v40_v2, %v38_v1  ;;  %v46_v6 = vstv %s83_s23 }
  0x14   :  { %v47_v7 = vmul.f32 %v46_v6, %v44_v3  ;;  %v52_v8 = vstv %s84_s24 }
  0x15   :  { %v42_v10 = vadd.f32 %v41_v5, %v37_v0  ;;  %v53_v11 = vmul.f32 %v52_v8, %v50_v4  ;;  %v58_v12 = vstv %s85_s25 }
  0x16   :  { %v59_v14 = vmul.f32 %v58_v12, %v56_v9 }
  0x17   :  { %v48_v13 = vadd.f32 %v47_v7, %v42_v10 }
  0x19   :  { %v54_v15 = vadd.f32 %v53_v11, %v48_v13 }
  0x1b   :  { %v60_v16 = vadd.f32 %v59_v14, %v54_v15 }
  0x1d   :  { %v61_v17 = vmul.f32 0.5, %v60_v16 }
  0x1f   :  { %91 = vtanh.f32 %v61_v17 }
  0x25   :  { %v92_v18 = vpop.eup %91 }
  0x26   :  { %v63_v19 = vmul.f32 0.5, %v92_v18 }
  0x28   :  { %v64_v20 = vadd.f32 0.5, %v63_v19 }
  0x2a   :  { %65 = vst [vmem:[#allocation8] sm:$0xff] %v64_v20 }
  0x2b   :  { %76 = dma.vmem_to_hbm [thread:$0]  %s72_s2, 128, %s74_s30, [#allocation7]  }
  0x2c   :  { %157 = dma.done.wait [#allocation7], 128  }
  0x2d   :  { %158 = vsyncadd [#allocation7], 4294967168 }
  0x2e   :  { %81 = vsyncpa [#allocation6], 1 }
  0x2f   :  { %82 = vsyncpa [#allocation7], 1 }

</bundles_post_ra>
